<compile_context>
chip_gen: v6e
topology: v6e:2x2x1
jax: 0.10.0
libtpu: 0.0.40
codegen_flags: <defaults>
</compile_context>

<pallas_src>
import functools

import jax
import jax.numpy as jnp
import numpy as np
from jax.experimental import pallas as pl
from jax.experimental.pallas import tpu as pltpu

_LN_EPS = 1e-5  # PyTorch LayerNorm default


# --------------------------------------------------------------------------- #
# LayerNorm helpers (f32 math)
# --------------------------------------------------------------------------- #
def _layer_norm(y, gamma, beta, eps=_LN_EPS):
    """Plain LN over the last axis (used by the pure-JAX reference)."""
    mu = jnp.mean(y, axis=-1, keepdims=True)
    var = jnp.mean((y - mu) ** 2, axis=-1, keepdims=True)
    return (y - mu) * jax.lax.rsqrt(var + eps) * gamma + beta


def _ln_full(y, gamma, beta):
    """LN over all lanes, sum * (1/n) instead of mean/divide."""
    n = y.shape[-1]
    mu = jnp.sum(y, axis=-1, keepdims=True) * (1.0 / n)
    d = y - mu
    var = jnp.sum(d * d, axis=-1, keepdims=True) * (1.0 / n)
    return d * jax.lax.rsqrt(var + _LN_EPS) * gamma + beta


def _ln_two_groups(y, gamma, beta, n_left, n_right):
    """Per-half LN on a fused [B, n_left+n_right] activation (full-lane, masked)."""
    lane = jax.lax.broadcasted_iota(jnp.int32, y.shape, 1)
    left = lane < n_left
    s_all = jnp.sum(y, axis=-1, keepdims=True)
    s_l = jnp.sum(jnp.where(left, y, 0.0), axis=-1, keepdims=True)
    mean = jnp.where(left, s_l * (1.0 / n_left), (s_all - s_l) * (1.0 / n_right))
    d = y - mean
    dsq = d * d
    v_all = jnp.sum(dsq, axis=-1, keepdims=True)
    v_l = jnp.sum(jnp.where(left, dsq, 0.0), axis=-1, keepdims=True)
    var = jnp.where(left, v_l * (1.0 / n_left), (v_all - v_l) * (1.0 / n_right))
    return d * jax.lax.rsqrt(var + _LN_EPS) * gamma + beta


def _ln_segments(z, gamma, beta, n_xyz, n_rot):
    """Per-segment LN on lanes [0, n_xyz) and [n_xyz, n_xyz+n_rot); rest -> 0."""
    lane = jax.lax.broadcasted_iota(jnp.int32, z.shape, 1)
    m_x = lane < n_xyz
    m_r = (lane >= n_xyz) & (lane < n_xyz + n_rot)
    s_x = jnp.sum(jnp.where(m_x, z, 0.0), axis=-1, keepdims=True)
    s_r = jnp.sum(jnp.where(m_r, z, 0.0), axis=-1, keepdims=True)
    mean = jnp.where(m_x, s_x * (1.0 / n_xyz), s_r * (1.0 / n_rot))
    d = jnp.where(m_x | m_r, z - mean, 0.0)
    dsq = d * d
    v_x = jnp.sum(jnp.where(m_x, dsq, 0.0), axis=-1, keepdims=True) * (1.0 / n_xyz)
    v_r = jnp.sum(jnp.where(m_r, dsq, 0.0), axis=-1, keepdims=True) * (1.0 / n_rot)
    var = jnp.where(m_x, v_x, jnp.where(m_r, v_r, 1.0))
    return d * jax.lax.rsqrt(var + _LN_EPS) * gamma + beta  # beta padded with 0


# --------------------------------------------------------------------------- #
# Pallas kernel
# --------------------------------------------------------------------------- #
def _pose_predictor_kernel(
        # inputs
        x_ref, w1_ref, w2_ref, wh1_ref, wh2_ref, p_ref, gt_ref,
        # outputs
        pose_ref, loss_ref,
        *, xyz_dim, rot_dim, n_left, n_right, tail_rows, has_pad):
    f32 = jnp.float32
    bf16 = jnp.bfloat16

    def row(r):
        # static 1-sublane read from the packed [12, 128] bias/LN operand
        return p_ref[pl.ds(r, 1), :]

    x = x_ref[...]                                   # [TB, IN] bf16

    # pred_pose trunk: Linear -> LN -> ReLU  (x2), resident 128-wide weights.
    h = jnp.dot(x, w1_ref[...], preferred_element_type=f32) + row(0)
    h = jnp.maximum(_ln_full(h, row(1), row(2)), 0.0)
    h = jnp.dot(h.astype(bf16), w2_ref[...], preferred_element_type=f32) + row(3)
    h = jnp.maximum(_ln_full(h, row(4), row(5)), 0.0)

    # Fused xyz/rot head, layer 1: one [state, sx+sr] matmul + per-head LN + ReLU.
    y = jnp.dot(h.astype(bf16), wh1_ref[...], preferred_element_type=f32) + row(6)
    y = jnp.maximum(_ln_two_groups(y, row(7), row(8), n_left, n_right), 0.0)

    # Fused head layer 2: block-diagonal [sx+sr, 128] matmul (lanes 0:3 xyz,
    # 3:12 rot, rest zero-padded) + per-segment LN.  activate_last=False.
    z = jnp.dot(y.astype(bf16), wh2_ref[...], preferred_element_type=f32) + row(9)
    pose = _ln_segments(z, row(10), row(11), xyz_dim, rot_dim)

    # Narrow 12-lane store (pose_pred_approx = cat([xyz, rot])): 48 B/row
    # instead of a 512 B/row padded full-tile write.
    npose = xyz_dim + rot_dim
    pose12 = pose[:, :npose]
    pose_ref[...] = pose12.astype(pose_ref.dtype)

    # Per-block loss partial sums (SMEM).
    # TODO(synk): transform_rot9D_to_matrix is not in the source; assumed to be a
    # plain reshape to (B, 3, 3), so the L1 loss on the flat 9-vector is identical.
    diff = pose12 - gt_ref[...]                      # [TB, 12] f32
    lane = jax.lax.broadcasted_iota(jnp.int32, diff.shape, 1)
    m_xyz = lane < xyz_dim
    m_rot = lane >= xyz_dim

    def _write(row_valid):
        mx = m_xyz if row_valid is None else (m_xyz & row_valid)
        mr = m_rot if row_valid is None else (m_rot & row_valid)
        loss_ref[0, 0] = jnp.sum(jnp.where(mx, diff * diff, 0.0))   # MSE partial
        loss_ref[0, 1] = jnp.sum(jnp.where(mr, jnp.abs(diff), 0.0))  # L1 partial

    if has_pad:
        last = pl.num_programs(0) - 1

        @pl.when(pl.program_id(0) != last)
        def _():
            _write(None)

        @pl.when(pl.program_id(0) == last)
        def _():
            r = jax.lax.broadcasted_iota(jnp.int32, diff.shape, 0)
            _write(r < tail_rows)
    else:
        _write(None)


# --------------------------------------------------------------------------- #
# Ground-truth decomposition (no [B,4,4] scatter round-trip)
# --------------------------------------------------------------------------- #
def _gt_xyz_rot(p9):
    # TODO(synk): pose9d_to_matrix convention is not in the source; assumed
    # [xyz(3), 6D rotation] with Gram-Schmidt (Zhou et al.), the two 3-vectors
    # becoming the first two COLUMNS of R, flattened row-major to 9.
    xyz = p9[:, :3]
    a1, a2 = p9[:, 3:6], p9[:, 6:9]
    b1 = a1 / jnp.linalg.norm(a1, axis=-1, keepdims=True)
    a2p = a2 - jnp.sum(b1 * a2, axis=-1, keepdims=True) * b1
    b2 = a2p / jnp.linalg.norm(a2p, axis=-1, keepdims=True)
    b3 = jnp.cross(b1, b2)
    rot = jnp.stack([b1, b2, b3], axis=-1).reshape(p9.shape[0], 9)
    return xyz, rot


# --------------------------------------------------------------------------- #
# Parameter init / packing
# --------------------------------------------------------------------------- #
def init_params(key, input_size, state_size, sx, sr, xyz_dim, rot_dim):
    """Deterministic synthetic parameters for the 6 Linear+LayerNorm layers."""
    layer_dims = [
        (input_size, state_size), (state_size, state_size),    # pred_pose
        (state_size, sx), (sx, xyz_dim),                        # pred_pose_xyz
        (state_size, sr), (sr, rot_dim),                        # pred_pose_rot
    ]
    params = []
    for fi, fo in layer_dims:
        key, kw, kb, kg, kbe = jax.random.split(key, 5)
        w = jax.random.normal(kw, (fi, fo), jnp.float32) / jnp.sqrt(fi)
        b = 0.01 * jax.random.normal(kb, (1, fo), jnp.float32)
        g = 1.0 + 0.1 * jax.random.normal(kg, (1, fo), jnp.float32)
        be = 0.1 * jax.random.normal(kbe, (1, fo), jnp.float32)
        params += [w, b, g, be]
    return params


def pack_params(params, *, head_split, xyz_dim, rot_dim, out_lanes=128):
    """Fuse/pad the 24 raw tensors into 5 kernel operands (weights in bf16)."""
    (w1, b1, g1, be1, w2, b2, g2, be2,
     wx1, bx1, gx1, bex1, wx2, bx2, gx2, bex2,
     wr1, br1, gr1, ber1, wr2, br2, gr2, ber2) = params
    sx, sr = wx1.shape[1], wr1.shape[1]
    state = w1.shape[1]
    assert sx == head_split
    assert state == sx + sr == out_lanes, "fused-head layout assumes sx+sr == state_size == 128"
    assert xyz_dim + rot_dim <= out_lanes
    bf16 = jnp.bfloat16

    W1 = w1.astype(bf16)                                         # [IN, state]
    W2 = w2.astype(bf16)                                         # [state, state]
    WH1 = jnp.concatenate([wx1, wr1], axis=1).astype(bf16)       # [state, sx+sr]
    WH2 = jnp.zeros((sx + sr, out_lanes), jnp.float32)           # block-diag, padded
    WH2 = WH2.at[:sx, :xyz_dim].set(wx2)
    WH2 = WH2.at[sx:, xyz_dim:xyz_dim + rot_dim].set(wr2)
    WH2 = WH2.astype(bf16)

    def _pad(v):
        return jnp.pad(v, ((0, 0), (0, out_lanes - v.shape[1])))

    P = jnp.concatenate([
        b1, g1, be1, b2, g2, be2,
        jnp.concatenate([bx1, br1], axis=1),
        jnp.concatenate([gx1, gr1], axis=1),
        jnp.concatenate([bex1, ber1], axis=1),
        _pad(jnp.concatenate([bx2, br2], axis=1)),
        _pad(jnp.concatenate([gx2, gr2], axis=1)),
        _pad(jnp.concatenate([bex2, ber2], axis=1)),
    ], axis=0).astype(jnp.float32)                               # [12, 128]
    return W1, W2, WH1, WH2, P


def _round_up(n, m):
    return ((n + m - 1) // m) * m


def _pick_tb(b):
    # 512-1024 row blocks for large batches (85%+ of HBM roofline vs ~63% @256),
    # at least two grid blocks for medium batches (v7x dual-TC sharding), capped
    # at 1024 to stay inside v5e's 16 MiB scoped-VMEM default with headroom.
    return min(1024, max(16, _round_up(pl.cdiv(b, 2), 16)))


# --------------------------------------------------------------------------- #
# Forward wrapper
# --------------------------------------------------------------------------- #
@functools.partial(jax.jit,
                   static_argnames=("head_split", "xyz_dim", "rot_dim",
                                    "xyz_loss_coef", "rot_loss_coef"))
def pose_predictor_forward(x, rel_goal_gt, packed, *, head_split,
                           xyz_dim=3, rot_dim=9,
                           xyz_loss_coef=1.0, rot_loss_coef=1.0):
    if x.ndim == 3:                                   # x.flatten(1, 2)
        x = x.reshape(x.shape[0], -1)
    b = x.shape[0]
    W1, W2, WH1, WH2, P = packed
    in_f, state = W1.shape
    heads = WH1.shape[1]
    lanes = WH2.shape[1]
    n_right = heads - head_split
    npose = xyz_dim + rot_dim

    # Ground-truth decomposition (tiny plain-JAX glue, no 4x4 matrix).
    gt_xyz, gt_rot = _gt_xyz_rot(rel_goal_gt)
    gt = jnp.concatenate([gt_xyz, gt_rot], axis=-1)   # [B, 12]

    # Batch tiling: bf16-friendly row blocks, "parallel" grid axis.
    tb = _pick_tb(b)
    b_pad = _round_up(b, tb)
    nblk = b_pad // tb
    has_pad = b_pad != b
    tail_rows = b - (nblk - 1) * tb

    x_p = jnp.pad(x.astype(jnp.bfloat16), ((0, b_pad - b), (0, 0)))
    gt_p = jnp.pad(gt.astype(jnp.float32), ((0, b_pad - b), (0, 0)))  # [b_pad, 12]

    kernel = functools.partial(
        _pose_predictor_kernel,
        xyz_dim=xyz_dim, rot_dim=rot_dim, n_left=head_split, n_right=n_right,
        tail_rows=tail_rows, has_pad=has_pad)

    pose_pad, partial = pl.pallas_call(
        kernel,
        out_shape=(jax.ShapeDtypeStruct((b_pad, npose), jnp.float32),
                   jax.ShapeDtypeStruct((nblk, 2), jnp.float32)),
        grid=(nblk,),
        in_specs=[
            pl.BlockSpec((tb, in_f), lambda i: (i, 0)),        # x (row-tiled)
            pl.BlockSpec((in_f, state), lambda i: (0, 0)),     # W1 (resident)
            pl.BlockSpec((state, state), lambda i: (0, 0)),    # W2 (resident)
            pl.BlockSpec((state, heads), lambda i: (0, 0)),    # fused head W1
            pl.BlockSpec((heads, lanes), lambda i: (0, 0)),    # fused head W2 (padded)
            pl.BlockSpec((P.shape[0], lanes), lambda i: (0, 0)),  # packed bias/LN
            pl.BlockSpec((tb, npose), lambda i: (i, 0)),       # gt, 12 lanes only
        ],
        out_specs=(
            pl.BlockSpec((tb, npose), lambda i: (i, 0)),       # pose, 12 lanes only
            pl.BlockSpec((1, 2), lambda i: (i, 0),             # per-block loss partials
                         memory_space=pltpu.MemorySpace.SMEM),
        ),
        compiler_params=pltpu.CompilerParams(
            dimension_semantics=("parallel",),
            vmem_limit_bytes=32 * 1024 * 1024),
    )(x_p, W1, W2, WH1, WH2, P, gt_p)

    pose_pred = pose_pad[:b]                          # row slice only (48 B/row)
    xyz_loss = jnp.sum(partial[:, 0]) * (xyz_loss_coef / (b * xyz_dim))
    rot_loss = jnp.sum(partial[:, 1]) * (rot_loss_coef / (b * rot_dim))
    return rot_loss + xyz_loss, pose_pred


# --------------------------------------------------------------------------- #
# Pure-JAX reference (mirrors kernel numerics: bf16 matmuls, f32 LN)
# --------------------------------------------------------------------------- #
def _reference_forward(x, rel_goal_gt, params, xyz_dim, rot_dim,
                       xyz_loss_coef, rot_loss_coef):
    if x.ndim == 3:
        x = x.reshape(x.shape[0], -1)
    bf16 = jnp.bfloat16
    (w1, b1, g1, be1, w2, b2, g2, be2,
     wx1, bx1, gx1, bex1, wx2, bx2, gx2, bex2,
     wr1, br1, gr1, ber1, wr2, br2, gr2, ber2) = params

    def lin(a, w, bb):
        return jnp.dot(a.astype(bf16), w.astype(bf16),
                       preferred_element_type=jnp.float32) + bb

    h = jnp.maximum(_layer_norm(lin(x, w1, b1), g1, be1), 0.0)
    h = jnp.maximum(_layer_norm(lin(h, w2, b2), g2, be2), 0.0)
    hx = jnp.maximum(_layer_norm(lin(h, wx1, bx1), gx1, bex1), 0.0)
    xyz = _layer_norm(lin(hx, wx2, bx2), gx2, bex2)
    hr = jnp.maximum(_layer_norm(lin(h, wr1, br1), gr1, ber1), 0.0)
    rot = _layer_norm(lin(hr, wr2, br2), gr2, ber2)
    pose = jnp.concatenate([xyz, rot], axis=-1)

    gt_xyz, gt_rot = _gt_xyz_rot(rel_goal_gt)
    rot_loss = jnp.mean(jnp.abs(rot - gt_rot)) * rot_loss_coef
    xyz_loss = jnp.mean((xyz - gt_xyz) ** 2) * xyz_loss_coef
    return rot_loss + xyz_loss, pose


# --------------------------------------------------------------------------- #
if __name__ == "__main__":
    key = jax.random.PRNGKey(0)
    B, T, D = 8, 2, 16                     # x.dim()==3 path -> flatten(1,2)
    input_size = T * D
    state_size = 128
    sx = sr = 64
    xyz_dim, rot_dim = 3, 9

    kx, kg, kp = jax.random.split(key, 3)
    x = jax.random.normal(kx, (B, T, D), jnp.float32)
    rel_goal_gt = jax.random.normal(kg, (B, 9), jnp.float32)   # obs['rel_goal_gt']
    params = init_params(kp, input_size, state_size, sx, sr, xyz_dim, rot_dim)
    packed = pack_params(params, head_split=sx, xyz_dim=xyz_dim, rot_dim=rot_dim)

    loss, pose_pred = pose_predictor_forward(
        x, rel_goal_gt, packed, head_split=sx,
        xyz_dim=xyz_dim, rot_dim=rot_dim, xyz_loss_coef=1.0, rot_loss_coef=1.0)
    jax.block_until_ready((loss, pose_pred))

    # Pure-JAX reference check (same bf16-matmul / f32-LN numerics).
    loss_ref, pose_ref = _reference_forward(
        x, rel_goal_gt, params, xyz_dim, rot_dim, 1.0, 1.0)
    assert pose_pred.shape == (B, xyz_dim + rot_dim)
    assert np.allclose(np.asarray(pose_pred), np.asarray(pose_ref),
                       atol=1e-3, rtol=1e-3)
    assert np.allclose(float(loss), float(loss_ref), atol=1e-3, rtol=1e-3)
    print("KERNEL_OK")
</pallas_src>

<mosaic_0001>
module attributes {stable_mosaic.version = 11 : i64} {
  func.func @_pose_predictor_kernel(%arg0: i32, %arg1: memref<16x32xbf16, #tpu.memory_space<vmem>>, %arg2: memref<32x128xbf16, #tpu.memory_space<vmem>>, %arg3: memref<128x128xbf16, #tpu.memory_space<vmem>>, %arg4: memref<128x128xbf16, #tpu.memory_space<vmem>>, %arg5: memref<128x128xbf16, #tpu.memory_space<vmem>>, %arg6: memref<12x128xf32, #tpu.memory_space<vmem>>, %arg7: memref<16x12xf32, #tpu.memory_space<vmem>>, %arg8: memref<16x12xf32, #tpu.memory_space<vmem>>, %arg9: memref<1x2xf32, #tpu.memory_space<smem>>) attributes {dimension_semantics = [#tpu.dimension_semantics<parallel>], iteration_bounds = array<i64: 1>, scalar_prefetch = 0 : i64, scratch_operands = 0 : i64, tpu.core_type = #tpu.core_type<tc>, window_params = [{transform_indices = @transform_0, window_bounds = array<i64: 16, 32>}, {pipeline_mode = #tpu.pipeline_mode<synchronous>, transform_indices = @transform_1, window_bounds = array<i64: 32, 128>}, {pipeline_mode = #tpu.pipeline_mode<synchronous>, transform_indices = @transform_2, window_bounds = array<i64: 128, 128>}, {pipeline_mode = #tpu.pipeline_mode<synchronous>, transform_indices = @transform_3, window_bounds = array<i64: 128, 128>}, {pipeline_mode = #tpu.pipeline_mode<synchronous>, transform_indices = @transform_4, window_bounds = array<i64: 128, 128>}, {pipeline_mode = #tpu.pipeline_mode<synchronous>, transform_indices = @transform_5, window_bounds = array<i64: 12, 128>}, {transform_indices = @transform_6, window_bounds = array<i64: 16, 12>}, {transform_indices = @transform_7, window_bounds = array<i64: 16, 12>}, {transform_indices = @transform_8, window_bounds = array<i64: 1, 2>}]} {
    %c0 = arith.constant 0 : index
    %c0_0 = arith.constant 0 : index
    %0 = vector.load %arg1[%c0, %c0_0] : memref<16x32xbf16, #tpu.memory_space<vmem>>, vector<16x32xbf16>
    %c0_1 = arith.constant 0 : index
    %c0_2 = arith.constant 0 : index
    %1 = vector.load %arg2[%c0_1, %c0_2] : memref<32x128xbf16, #tpu.memory_space<vmem>>, vector<32x128xbf16>
    %cst = arith.constant dense<0.000000e+00> : vector<16x128xf32>
    %2 = tpu.matmul %0, %1, %cst {dimension_numbers = #tpu.dot_dimension_numbers<[1], [0], [0], [1], [0, 0, 1, 1], [], []>} : vector<16x32xbf16>, vector<32x128xbf16>, vector<16x128xf32> -> vector<16x128xf32>
    %c0_3 = arith.constant 0 : index
    %c0_4 = arith.constant 0 : index
    %3 = vector.load %arg6[%c0_3, %c0_4] : memref<12x128xf32, #tpu.memory_space<vmem>>, vector<1x128xf32>
    %4 = vector.broadcast %3 : vector<1x128xf32> to vector<16x128xf32>
    %5 = arith.addf %2, %4 : vector<16x128xf32>
    %c1 = arith.constant 1 : index
    %c0_5 = arith.constant 0 : index
    %6 = vector.load %arg6[%c1, %c0_5] : memref<12x128xf32, #tpu.memory_space<vmem>>, vector<1x128xf32>
    %c2 = arith.constant 2 : index
    %c0_6 = arith.constant 0 : index
    %7 = vector.load %arg6[%c2, %c0_6] : memref<12x128xf32, #tpu.memory_space<vmem>>, vector<1x128xf32>
    %cst_7 = arith.constant dense<0.000000e+00> : vector<16xf32>
    %8 = vector.multi_reduction <add>, %5, %cst_7 [1] : vector<16x128xf32> to vector<16xf32>
    %9 = vector.shape_cast %8 : vector<16xf32> to vector<16x1xf32>
    %cst_8 = arith.constant 7.812500e-03 : f32
    %10 = vector.broadcast %cst_8 : f32 to vector<16x1xf32>
    %11 = arith.mulf %9, %10 : vector<16x1xf32>
    %12 = vector.broadcast %11 : vector<16x1xf32> to vector<16x128xf32>
    %13 = arith.subf %5, %12 : vector<16x128xf32>
    %14 = arith.mulf %13, %13 : vector<16x128xf32>
    %cst_9 = arith.constant dense<0.000000e+00> : vector<16xf32>
    %15 = vector.multi_reduction <add>, %14, %cst_9 [1] : vector<16x128xf32> to vector<16xf32>
    %16 = vector.shape_cast %15 : vector<16xf32> to vector<16x1xf32>
    %cst_10 = arith.constant 7.812500e-03 : f32
    %17 = vector.broadcast %cst_10 : f32 to vector<16x1xf32>
    %18 = arith.mulf %16, %17 : vector<16x1xf32>
    %cst_11 = arith.constant 9.99999974E-6 : f32
    %19 = vector.broadcast %cst_11 : f32 to vector<16x1xf32>
    %20 = arith.addf %18, %19 : vector<16x1xf32>
    %21 = math.rsqrt %20 : vector<16x1xf32>
    %22 = vector.broadcast %21 : vector<16x1xf32> to vector<16x128xf32>
    %23 = arith.mulf %13, %22 : vector<16x128xf32>
    %24 = vector.broadcast %6 : vector<1x128xf32> to vector<16x128xf32>
    %25 = arith.mulf %23, %24 : vector<16x128xf32>
    %26 = vector.broadcast %7 : vector<1x128xf32> to vector<16x128xf32>
    %27 = arith.addf %25, %26 : vector<16x128xf32>
    %cst_12 = arith.constant 0.000000e+00 : f32
    %28 = vector.broadcast %cst_12 : f32 to vector<16x128xf32>
    %29 = arith.maximumf %27, %28 : vector<16x128xf32>
    %30 = arith.truncf %29 : vector<16x128xf32> to vector<16x128xbf16>
    %c0_13 = arith.constant 0 : index
    %c0_14 = arith.constant 0 : index
    %31 = vector.load %arg3[%c0_13, %c0_14] : memref<128x128xbf16, #tpu.memory_space<vmem>>, vector<128x128xbf16>
    %cst_15 = arith.constant dense<0.000000e+00> : vector<16x128xf32>
    %32 = tpu.matmul %30, %31, %cst_15 {dimension_numbers = #tpu.dot_dimension_numbers<[1], [0], [0], [1], [0, 0, 1, 1], [], []>} : vector<16x128xbf16>, vector<128x128xbf16>, vector<16x128xf32> -> vector<16x128xf32>
    %c3 = arith.constant 3 : index
    %c0_16 = arith.constant 0 : index
    %33 = vector.load %arg6[%c3, %c0_16] : memref<12x128xf32, #tpu.memory_space<vmem>>, vector<1x128xf32>
    %34 = vector.broadcast %33 : vector<1x128xf32> to vector<16x128xf32>
    %35 = arith.addf %32, %34 : vector<16x128xf32>
    %c4 = arith.constant 4 : index
    %c0_17 = arith.constant 0 : index
    %36 = vector.load %arg6[%c4, %c0_17] : memref<12x128xf32, #tpu.memory_space<vmem>>, vector<1x128xf32>
    %c5 = arith.constant 5 : index
    %c0_18 = arith.constant 0 : index
    %37 = vector.load %arg6[%c5, %c0_18] : memref<12x128xf32, #tpu.memory_space<vmem>>, vector<1x128xf32>
    %cst_19 = arith.constant dense<0.000000e+00> : vector<16xf32>
    %38 = vector.multi_reduction <add>, %35, %cst_19 [1] : vector<16x128xf32> to vector<16xf32>
    %39 = vector.shape_cast %38 : vector<16xf32> to vector<16x1xf32>
    %cst_20 = arith.constant 7.812500e-03 : f32
    %40 = vector.broadcast %cst_20 : f32 to vector<16x1xf32>
    %41 = arith.mulf %39, %40 : vector<16x1xf32>
    %42 = vector.broadcast %41 : vector<16x1xf32> to vector<16x128xf32>
    %43 = arith.subf %35, %42 : vector<16x128xf32>
    %44 = arith.mulf %43, %43 : vector<16x128xf32>
    %cst_21 = arith.constant dense<0.000000e+00> : vector<16xf32>
    %45 = vector.multi_reduction <add>, %44, %cst_21 [1] : vector<16x128xf32> to vector<16xf32>
    %46 = vector.shape_cast %45 : vector<16xf32> to vector<16x1xf32>
    %cst_22 = arith.constant 7.812500e-03 : f32
    %47 = vector.broadcast %cst_22 : f32 to vector<16x1xf32>
    %48 = arith.mulf %46, %47 : vector<16x1xf32>
    %cst_23 = arith.constant 9.99999974E-6 : f32
    %49 = vector.broadcast %cst_23 : f32 to vector<16x1xf32>
    %50 = arith.addf %48, %49 : vector<16x1xf32>
    %51 = math.rsqrt %50 : vector<16x1xf32>
    %52 = vector.broadcast %51 : vector<16x1xf32> to vector<16x128xf32>
    %53 = arith.mulf %43, %52 : vector<16x128xf32>
    %54 = vector.broadcast %36 : vector<1x128xf32> to vector<16x128xf32>
    %55 = arith.mulf %53, %54 : vector<16x128xf32>
    %56 = vector.broadcast %37 : vector<1x128xf32> to vector<16x128xf32>
    %57 = arith.addf %55, %56 : vector<16x128xf32>
    %cst_24 = arith.constant 0.000000e+00 : f32
    %58 = vector.broadcast %cst_24 : f32 to vector<16x128xf32>
    %59 = arith.maximumf %57, %58 : vector<16x128xf32>
    %60 = arith.truncf %59 : vector<16x128xf32> to vector<16x128xbf16>
    %c0_25 = arith.constant 0 : index
    %c0_26 = arith.constant 0 : index
    %61 = vector.load %arg4[%c0_25, %c0_26] : memref<128x128xbf16, #tpu.memory_space<vmem>>, vector<128x128xbf16>
    %cst_27 = arith.constant dense<0.000000e+00> : vector<16x128xf32>
    %62 = tpu.matmul %60, %61, %cst_27 {dimension_numbers = #tpu.dot_dimension_numbers<[1], [0], [0], [1], [0, 0, 1, 1], [], []>} : vector<16x128xbf16>, vector<128x128xbf16>, vector<16x128xf32> -> vector<16x128xf32>
    %c6 = arith.constant 6 : index
    %c0_28 = arith.constant 0 : index
    %63 = vector.load %arg6[%c6, %c0_28] : memref<12x128xf32, #tpu.memory_space<vmem>>, vector<1x128xf32>
    %64 = vector.broadcast %63 : vector<1x128xf32> to vector<16x128xf32>
    %65 = arith.addf %62, %64 : vector<16x128xf32>
    %c7 = arith.constant 7 : index
    %c0_29 = arith.constant 0 : index
    %66 = vector.load %arg6[%c7, %c0_29] : memref<12x128xf32, #tpu.memory_space<vmem>>, vector<1x128xf32>
    %c8 = arith.constant 8 : index
    %c0_30 = arith.constant 0 : index
    %67 = vector.load %arg6[%c8, %c0_30] : memref<12x128xf32, #tpu.memory_space<vmem>>, vector<1x128xf32>
    %68 = tpu.iota {dimensions = array<i32: 1>} : vector<16x128xi32>
    %c64_i32 = arith.constant 64 : i32
    %69 = vector.broadcast %c64_i32 : i32 to vector<16x128xi32>
    %70 = arith.cmpi slt, %68, %69 : vector<16x128xi32>
    %cst_31 = arith.constant dense<0.000000e+00> : vector<16xf32>
    %71 = vector.multi_reduction <add>, %65, %cst_31 [1] : vector<16x128xf32> to vector<16xf32>
    %72 = vector.shape_cast %71 : vector<16xf32> to vector<16x1xf32>
    %cst_32 = arith.constant 0.000000e+00 : f32
    %73 = vector.broadcast %cst_32 : f32 to vector<16x128xf32>
    %74 = arith.select %70, %65, %73 : vector<16x128xi1>, vector<16x128xf32>
    %cst_33 = arith.constant dense<0.000000e+00> : vector<16xf32>
    %75 = vector.multi_reduction <add>, %74, %cst_33 [1] : vector<16x128xf32> to vector<16xf32>
    %76 = vector.shape_cast %75 : vector<16xf32> to vector<16x1xf32>
    %cst_34 = arith.constant 1.562500e-02 : f32
    %77 = vector.broadcast %cst_34 : f32 to vector<16x1xf32>
    %78 = arith.mulf %76, %77 : vector<16x1xf32>
    %79 = arith.subf %72, %76 : vector<16x1xf32>
    %cst_35 = arith.constant 1.562500e-02 : f32
    %80 = vector.broadcast %cst_35 : f32 to vector<16x1xf32>
    %81 = arith.mulf %79, %80 : vector<16x1xf32>
    %82 = vector.shape_cast %78 : vector<16x1xf32> to vector<16x1xf32>
    %83 = vector.broadcast %82 : vector<16x1xf32> to vector<16x128xf32>
    %84 = vector.shape_cast %81 : vector<16x1xf32> to vector<16x1xf32>
    %85 = vector.broadcast %84 : vector<16x1xf32> to vector<16x128xf32>
    %86 = arith.select %70, %83, %85 : vector<16x128xi1>, vector<16x128xf32>
    %87 = arith.subf %65, %86 : vector<16x128xf32>
    %88 = arith.mulf %87, %87 : vector<16x128xf32>
    %cst_36 = arith.constant dense<0.000000e+00> : vector<16xf32>
    %89 = vector.multi_reduction <add>, %88, %cst_36 [1] : vector<16x128xf32> to vector<16xf32>
    %90 = vector.shape_cast %89 : vector<16xf32> to vector<16x1xf32>
    %cst_37 = arith.constant 0.000000e+00 : f32
    %91 = vector.broadcast %cst_37 : f32 to vector<16x128xf32>
    %92 = arith.select %70, %88, %91 : vector<16x128xi1>, vector<16x128xf32>
    %cst_38 = arith.constant dense<0.000000e+00> : vector<16xf32>
    %93 = vector.multi_reduction <add>, %92, %cst_38 [1] : vector<16x128xf32> to vector<16xf32>
    %94 = vector.shape_cast %93 : vector<16xf32> to vector<16x1xf32>
    %cst_39 = arith.constant 1.562500e-02 : f32
    %95 = vector.broadcast %cst_39 : f32 to vector<16x1xf32>
    %96 = arith.mulf %94, %95 : vector<16x1xf32>
    %97 = arith.subf %90, %94 : vector<16x1xf32>
    %cst_40 = arith.constant 1.562500e-02 : f32
    %98 = vector.broadcast %cst_40 : f32 to vector<16x1xf32>
    %99 = arith.mulf %97, %98 : vector<16x1xf32>
    %100 = vector.shape_cast %96 : vector<16x1xf32> to vector<16x1xf32>
    %101 = vector.broadcast %100 : vector<16x1xf32> to vector<16x128xf32>
    %102 = vector.shape_cast %99 : vector<16x1xf32> to vector<16x1xf32>
    %103 = vector.broadcast %102 : vector<16x1xf32> to vector<16x128xf32>
    %104 = arith.select %70, %101, %103 : vector<16x128xi1>, vector<16x128xf32>
    %cst_41 = arith.constant 9.99999974E-6 : f32
    %105 = vector.broadcast %cst_41 : f32 to vector<16x128xf32>
    %106 = arith.addf %104, %105 : vector<16x128xf32>
    %107 = math.rsqrt %106 : vector<16x128xf32>
    %108 = arith.mulf %87, %107 : vector<16x128xf32>
    %109 = vector.broadcast %66 : vector<1x128xf32> to vector<16x128xf32>
    %110 = arith.mulf %108, %109 : vector<16x128xf32>
    %111 = vector.broadcast %67 : vector<1x128xf32> to vector<16x128xf32>
    %112 = arith.addf %110, %111 : vector<16x128xf32>
    %cst_42 = arith.constant 0.000000e+00 : f32
    %113 = vector.broadcast %cst_42 : f32 to vector<16x128xf32>
    %114 = arith.maximumf %112, %113 : vector<16x128xf32>
    %115 = arith.truncf %114 : vector<16x128xf32> to vector<16x128xbf16>
    %c0_43 = arith.constant 0 : index
    %c0_44 = arith.constant 0 : index
    %116 = vector.load %arg5[%c0_43, %c0_44] : memref<128x128xbf16, #tpu.memory_space<vmem>>, vector<128x128xbf16>
    %cst_45 = arith.constant dense<0.000000e+00> : vector<16x128xf32>
    %117 = tpu.matmul %115, %116, %cst_45 {dimension_numbers = #tpu.dot_dimension_numbers<[1], [0], [0], [1], [0, 0, 1, 1], [], []>} : vector<16x128xbf16>, vector<128x128xbf16>, vector<16x128xf32> -> vector<16x128xf32>
    %c9 = arith.constant 9 : index
    %c0_46 = arith.constant 0 : index
    %118 = vector.load %arg6[%c9, %c0_46] : memref<12x128xf32, #tpu.memory_space<vmem>>, vector<1x128xf32>
    %119 = vector.broadcast %118 : vector<1x128xf32> to vector<16x128xf32>
    %120 = arith.addf %117, %119 : vector<16x128xf32>
    %c10 = arith.constant 10 : index
    %c0_47 = arith.constant 0 : index
    %121 = vector.load %arg6[%c10, %c0_47] : memref<12x128xf32, #tpu.memory_space<vmem>>, vector<1x128xf32>
    %c11 = arith.constant 11 : index
    %c0_48 = arith.constant 0 : index
    %122 = vector.load %arg6[%c11, %c0_48] : memref<12x128xf32, #tpu.memory_space<vmem>>, vector<1x128xf32>
    %123 = tpu.iota {dimensions = array<i32: 1>} : vector<16x128xi32>
    %c3_i32 = arith.constant 3 : i32
    %124 = vector.broadcast %c3_i32 : i32 to vector<16x128xi32>
    %125 = arith.cmpi slt, %123, %124 : vector<16x128xi32>
    %c3_i32_49 = arith.constant 3 : i32
    %126 = vector.broadcast %c3_i32_49 : i32 to vector<16x128xi32>
    %127 = arith.cmpi sge, %123, %126 : vector<16x128xi32>
    %c12_i32 = arith.constant 12 : i32
    %128 = vector.broadcast %c12_i32 : i32 to vector<16x128xi32>
    %129 = arith.cmpi slt, %123, %128 : vector<16x128xi32>
    %130 = arith.andi %127, %129 : vector<16x128xi1>
    %cst_50 = arith.constant 0.000000e+00 : f32
    %131 = vector.broadcast %cst_50 : f32 to vector<16x128xf32>
    %132 = arith.select %125, %120, %131 : vector<16x128xi1>, vector<16x128xf32>
    %cst_51 = arith.constant dense<0.000000e+00> : vector<16xf32>
    %133 = vector.multi_reduction <add>, %132, %cst_51 [1] : vector<16x128xf32> to vector<16xf32>
    %134 = vector.shape_cast %133 : vector<16xf32> to vector<16x1xf32>
    %cst_52 = arith.constant 0.000000e+00 : f32
    %135 = vector.broadcast %cst_52 : f32 to vector<16x128xf32>
    %136 = arith.select %130, %120, %135 : vector<16x128xi1>, vector<16x128xf32>
    %cst_53 = arith.constant dense<0.000000e+00> : vector<16xf32>
    %137 = vector.multi_reduction <add>, %136, %cst_53 [1] : vector<16x128xf32> to vector<16xf32>
    %138 = vector.shape_cast %137 : vector<16xf32> to vector<16x1xf32>
    %cst_54 = arith.constant 0.333333343 : f32
    %139 = vector.broadcast %cst_54 : f32 to vector<16x1xf32>
    %140 = arith.mulf %134, %139 : vector<16x1xf32>
    %cst_55 = arith.constant 0.111111112 : f32
    %141 = vector.broadcast %cst_55 : f32 to vector<16x1xf32>
    %142 = arith.mulf %138, %141 : vector<16x1xf32>
    %143 = vector.shape_cast %140 : vector<16x1xf32> to vector<16x1xf32>
    %144 = vector.broadcast %143 : vector<16x1xf32> to vector<16x128xf32>
    %145 = vector.shape_cast %142 : vector<16x1xf32> to vector<16x1xf32>
    %146 = vector.broadcast %145 : vector<16x1xf32> to vector<16x128xf32>
    %147 = arith.select %125, %144, %146 : vector<16x128xi1>, vector<16x128xf32>
    %148 = arith.ori %125, %130 : vector<16x128xi1>
    %149 = arith.subf %120, %147 : vector<16x128xf32>
    %cst_56 = arith.constant 0.000000e+00 : f32
    %150 = vector.broadcast %cst_56 : f32 to vector<16x128xf32>
    %151 = arith.select %148, %149, %150 : vector<16x128xi1>, vector<16x128xf32>
    %152 = arith.mulf %151, %151 : vector<16x128xf32>
    %cst_57 = arith.constant 0.000000e+00 : f32
    %153 = vector.broadcast %cst_57 : f32 to vector<16x128xf32>
    %154 = arith.select %125, %152, %153 : vector<16x128xi1>, vector<16x128xf32>
    %cst_58 = arith.constant dense<0.000000e+00> : vector<16xf32>
    %155 = vector.multi_reduction <add>, %154, %cst_58 [1] : vector<16x128xf32> to vector<16xf32>
    %156 = vector.shape_cast %155 : vector<16xf32> to vector<16x1xf32>
    %cst_59 = arith.constant 0.333333343 : f32
    %157 = vector.broadcast %cst_59 : f32 to vector<16x1xf32>
    %158 = arith.mulf %156, %157 : vector<16x1xf32>
    %cst_60 = arith.constant 0.000000e+00 : f32
    %159 = vector.broadcast %cst_60 : f32 to vector<16x128xf32>
    %160 = arith.select %130, %152, %159 : vector<16x128xi1>, vector<16x128xf32>
    %cst_61 = arith.constant dense<0.000000e+00> : vector<16xf32>
    %161 = vector.multi_reduction <add>, %160, %cst_61 [1] : vector<16x128xf32> to vector<16xf32>
    %162 = vector.shape_cast %161 : vector<16xf32> to vector<16x1xf32>
    %cst_62 = arith.constant 0.111111112 : f32
    %163 = vector.broadcast %cst_62 : f32 to vector<16x1xf32>
    %164 = arith.mulf %162, %163 : vector<16x1xf32>
    %cst_63 = arith.constant 1.000000e+00 : f32
    %165 = vector.shape_cast %164 : vector<16x1xf32> to vector<16x1xf32>
    %166 = vector.broadcast %165 : vector<16x1xf32> to vector<16x128xf32>
    %167 = vector.broadcast %cst_63 : f32 to vector<16x128xf32>
    %168 = arith.select %130, %166, %167 : vector<16x128xi1>, vector<16x128xf32>
    %169 = vector.shape_cast %158 : vector<16x1xf32> to vector<16x1xf32>
    %170 = vector.broadcast %169 : vector<16x1xf32> to vector<16x128xf32>
    %171 = arith.select %125, %170, %168 : vector<16x128xi1>, vector<16x128xf32>
    %cst_64 = arith.constant 9.99999974E-6 : f32
    %172 = vector.broadcast %cst_64 : f32 to vector<16x128xf32>
    %173 = arith.addf %171, %172 : vector<16x128xf32>
    %174 = math.rsqrt %173 : vector<16x128xf32>
    %175 = arith.mulf %151, %174 : vector<16x128xf32>
    %176 = vector.broadcast %121 : vector<1x128xf32> to vector<16x128xf32>
    %177 = arith.mulf %175, %176 : vector<16x128xf32>
    %178 = vector.broadcast %122 : vector<1x128xf32> to vector<16x128xf32>
    %179 = arith.addf %177, %178 : vector<16x128xf32>
    %180 = vector.extract_strided_slice %179 {offsets = [0, 0], sizes = [16, 12], strides = [1, 1]} : vector<16x128xf32> to vector<16x12xf32>
    %c0_65 = arith.constant 0 : index
    %c0_66 = arith.constant 0 : index
    %181 = vector.load %arg8[%c0_65, %c0_66] : memref<16x12xf32, #tpu.memory_space<vmem>>, vector<16x12xf32>
    tpu.vector_store %arg8[%c0_65, %c0_66], %180 {strides = array<i32>} : memref<16x12xf32, #tpu.memory_space<vmem>>, vector<16x12xf32>,
    %c0_67 = arith.constant 0 : index
    %c0_68 = arith.constant 0 : index
    %182 = vector.load %arg7[%c0_67, %c0_68] : memref<16x12xf32, #tpu.memory_space<vmem>>, vector<16x12xf32>
    %183 = arith.subf %180, %182 : vector<16x12xf32>
    %184 = tpu.iota {dimensions = array<i32: 1>} : vector<16x12xi32>
    %c3_i32_69 = arith.constant 3 : i32
    %185 = vector.broadcast %c3_i32_69 : i32 to vector<16x12xi32>
    %186 = arith.cmpi slt, %184, %185 : vector<16x12xi32>
    %c3_i32_70 = arith.constant 3 : i32
    %187 = vector.broadcast %c3_i32_70 : i32 to vector<16x12xi32>
    %188 = arith.cmpi sge, %184, %187 : vector<16x12xi32>
    %c0_i32 = arith.constant 0 : i32
    %189 = arith.cmpi ne, %arg0, %c0_i32 : i32
    %190 = arith.extui %189 : i1 to i32
    %c0_i32_71 = arith.constant 0 : i32
    %191 = arith.cmpi ne, %190, %c0_i32_71 : i32
    scf.if %191 {
      %195 = arith.mulf %183, %183 : vector<16x12xf32>
      %cst_74 = arith.constant 0.000000e+00 : f32
      %196 = vector.broadcast %cst_74 : f32 to vector<16x12xf32>
      %197 = arith.select %186, %195, %196 : vector<16x12xi1>, vector<16x12xf32>
      %198 = vector.shape_cast %197 : vector<16x12xf32> to vector<1x16x12xf32>
      %cst_75 = arith.constant dense<0.000000e+00> : vector<1xf32>
      %199 = vector.multi_reduction <add>, %198, %cst_75 [1, 2] : vector<1x16x12xf32> to vector<1xf32>
      %200 = vector.shape_cast %199 : vector<1xf32> to vector<1x1x1xf32>
      %201 = vector.extract %200[0, 0, 0] : f32 from vector<1x1x1xf32>
      %c0_76 = arith.constant 0 : index
      %c0_77 = arith.constant 0 : index
      %202 = memref.load %arg9[%c0_76, %c0_77] : memref<1x2xf32, #tpu.memory_space<smem>>
      memref.store %201, %arg9[%c0_76, %c0_77] : memref<1x2xf32, #tpu.memory_space<smem>>
      %203 = math.absf %183 : vector<16x12xf32>
      %cst_78 = arith.constant 0.000000e+00 : f32
      %204 = vector.broadcast %cst_78 : f32 to vector<16x12xf32>
      %205 = arith.select %188, %203, %204 : vector<16x12xi1>, vector<16x12xf32>
      %206 = vector.shape_cast %205 : vector<16x12xf32> to vector<1x16x12xf32>
      %cst_79 = arith.constant dense<0.000000e+00> : vector<1xf32>
      %207 = vector.multi_reduction <add>, %206, %cst_79 [1, 2] : vector<1x16x12xf32> to vector<1xf32>
      %208 = vector.shape_cast %207 : vector<1xf32> to vector<1x1x1xf32>
      %209 = vector.extract %208[0, 0, 0] : f32 from vector<1x1x1xf32>
      %c0_80 = arith.constant 0 : index
      %c1_81 = arith.constant 1 : index
      %210 = memref.load %arg9[%c0_80, %c1_81] : memref<1x2xf32, #tpu.memory_space<smem>>
      memref.store %209, %arg9[%c0_80, %c1_81] : memref<1x2xf32, #tpu.memory_space<smem>>
    } else {
    }
    %c0_i32_72 = arith.constant 0 : i32
    %192 = arith.cmpi eq, %arg0, %c0_i32_72 : i32
    %193 = arith.extui %192 : i1 to i32
    %c0_i32_73 = arith.constant 0 : i32
    %194 = arith.cmpi ne, %193, %c0_i32_73 : i32
    scf.if %194 {
      %195 = tpu.iota {dimensions = array<i32: 0>} : vector<16x12xi32>
      %c8_i32 = arith.constant 8 : i32
      %196 = vector.broadcast %c8_i32 : i32 to vector<16x12xi32>
      %197 = arith.cmpi slt, %195, %196 : vector<16x12xi32>
      %198 = arith.andi %186, %197 : vector<16x12xi1>
      %199 = arith.andi %188, %197 : vector<16x12xi1>
      %200 = arith.mulf %183, %183 : vector<16x12xf32>
      %cst_74 = arith.constant 0.000000e+00 : f32
      %201 = vector.broadcast %cst_74 : f32 to vector<16x12xf32>
      %202 = arith.select %198, %200, %201 : vector<16x12xi1>, vector<16x12xf32>
      %203 = vector.shape_cast %202 : vector<16x12xf32> to vector<1x16x12xf32>
      %cst_75 = arith.constant dense<0.000000e+00> : vector<1xf32>
      %204 = vector.multi_reduction <add>, %203, %cst_75 [1, 2] : vector<1x16x12xf32> to vector<1xf32>
      %205 = vector.shape_cast %204 : vector<1xf32> to vector<1x1x1xf32>
      %206 = vector.extract %205[0, 0, 0] : f32 from vector<1x1x1xf32>
      %c0_76 = arith.constant 0 : index
      %c0_77 = arith.constant 0 : index
      %207 = memref.load %arg9[%c0_76, %c0_77] : memref<1x2xf32, #tpu.memory_space<smem>>
      memref.store %206, %arg9[%c0_76, %c0_77] : memref<1x2xf32, #tpu.memory_space<smem>>
      %208 = math.absf %183 : vector<16x12xf32>
      %cst_78 = arith.constant 0.000000e+00 : f32
      %209 = vector.broadcast %cst_78 : f32 to vector<16x12xf32>
      %210 = arith.select %199, %208, %209 : vector<16x12xi1>, vector<16x12xf32>
      %211 = vector.shape_cast %210 : vector<16x12xf32> to vector<1x16x12xf32>
      %cst_79 = arith.constant dense<0.000000e+00> : vector<1xf32>
      %212 = vector.multi_reduction <add>, %211, %cst_79 [1, 2] : vector<1x16x12xf32> to vector<1xf32>
      %213 = vector.shape_cast %212 : vector<1xf32> to vector<1x1x1xf32>
      %214 = vector.extract %213[0, 0, 0] : f32 from vector<1x1x1xf32>
      %c0_80 = arith.constant 0 : index
      %c1_81 = arith.constant 1 : index
      %215 = memref.load %arg9[%c0_80, %c1_81] : memref<1x2xf32, #tpu.memory_space<smem>>
      memref.store %214, %arg9[%c0_80, %c1_81] : memref<1x2xf32, #tpu.memory_space<smem>>
    } else {
    }
    return
  }
  func.func @transform_0(%arg0: i32) -> (i32, i32) {
    %c0_i32 = arith.constant 0 : i32
    %c0_i32_0 = arith.constant 0 : i32
    return %arg0, %c0_i32 : i32, i32
  }
  func.func @transform_1(%arg0: i32) -> (i32, i32) {
    %c0_i32 = arith.constant 0 : i32
    %c0_i32_0 = arith.constant 0 : i32
    %c0_i32_1 = arith.constant 0 : i32
    return %c0_i32, %c0_i32_0 : i32, i32
  }
  func.func @transform_2(%arg0: i32) -> (i32, i32) {
    %c0_i32 = arith.constant 0 : i32
    %c0_i32_0 = arith.constant 0 : i32
    %c0_i32_1 = arith.constant 0 : i32
    return %c0_i32, %c0_i32_0 : i32, i32
  }
  func.func @transform_3(%arg0: i32) -> (i32, i32) {
    %c0_i32 = arith.constant 0 : i32
    %c0_i32_0 = arith.constant 0 : i32
    %c0_i32_1 = arith.constant 0 : i32
    return %c0_i32, %c0_i32_0 : i32, i32
  }
  func.func @transform_4(%arg0: i32) -> (i32, i32) {
    %c0_i32 = arith.constant 0 : i32
    %c0_i32_0 = arith.constant 0 : i32
    %c0_i32_1 = arith.constant 0 : i32
    return %c0_i32, %c0_i32_0 : i32, i32
  }
  func.func @transform_5(%arg0: i32) -> (i32, i32) {
    %c0_i32 = arith.constant 0 : i32
    %c0_i32_0 = arith.constant 0 : i32
    %c0_i32_1 = arith.constant 0 : i32
    return %c0_i32, %c0_i32_0 : i32, i32
  }
  func.func @transform_6(%arg0: i32) -> (i32, i32) {
    %c0_i32 = arith.constant 0 : i32
    %c0_i32_0 = arith.constant 0 : i32
    return %arg0, %c0_i32 : i32, i32
  }
  func.func @transform_7(%arg0: i32) -> (i32, i32) {
    %c0_i32 = arith.constant 0 : i32
    %c0_i32_0 = arith.constant 0 : i32
    return %arg0, %c0_i32 : i32, i32
  }
  func.func @transform_8(%arg0: i32) -> (i32, i32) {
    %c0_i32 = arith.constant 0 : i32
    %c0_i32_0 = arith.constant 0 : i32
    return %arg0, %c0_i32 : i32, i32
  }
}

</mosaic_0001>

<bundles_post_ra>
// kernel: pose_predictor_forward.1
= control target key start
LH: loop header
LB: loop body
LE: loop exit
PB: predicated region body
PF: predicated region fallthrough
CT: control target
= control target key end

     0   :  { %v963_v1 = vmov 0.0   ;;  %vm964_vm0 = vmmov 0   ;;  %vm58_vm1 = vcmask 261120   ;;  %s1250_s0 = inlined_call_operand.vmem [shape: bf16[16,32], index: 0, kind: input, shape index: {}]   ;;  %s1251_s1 = inlined_call_operand.vmem [shape: bf16[32,128], index: 1, kind: input, shape index: {}]   ;;  %s1252_s2 = inlined_call_operand.vmem [shape: bf16[128,128], index: 2, kind: input, shape index: {}]   ;;  %s1253_s3 = inlined_call_operand.vmem [shape: bf16[128,128], index: 3, kind: input, shape index: {}]   ;;  %s1254_s4 = inlined_call_operand.vmem [shape: bf16[128,128], index: 4, kind: input, shape index: {}]   ;;  %s1255_s5 = inlined_call_operand.vmem [shape: f32[12,128], index: 5, kind: input, shape index: {}]   ;;  %s1256_s6 = inlined_call_operand.vmem [shape: f32[16,12], index: 6, kind: input, shape index: {}]   ;;  %s1257_s7 = inlined_call_operand.vmem [shape: f32[16,12], index: 7, kind: output, shape index: {0}]   ;;  %s1258_s8 = inlined_call_operand.vmem [shape: f32[1,2], index: 8, kind: output, shape index: {1}]  }
   0x1   :  { %v906_v0 = vld [vmem:[%s1251_s1 + $0x8] sm:$0xff]   ;;  %831 = vmatprep.subr.bf16.mxu0 %v963_v1  ;;  %839 = vmatprep.subr.bf16.mxu1 %v963_v1  ;;  %v907_v2 = vld [vmem:[%s1251_s1] sm:$0xff]  }
   0x2   :  { %832 = vmatpush3.bf16.msra.mxu0 %v906_v0  ;;  %835 = vmatprep.mubr.msk.bf16.mxu0 %vm964_vm0, %v963_v1  ;;  %v908_v3 = vld [vmem:[%s1250_s0] sm:$0xff]  }
   0x3   :  { %833 = vmatprep.subr.bf16.mxu0 %v963_v1  ;;  %855 = vmatprep.mubr.msk.bf16.mxu1 %vm964_vm0, %v963_v1 }
   0x6   :  { %834 = vmatpush3.bf16.msra.mxu0 %v907_v2 }
   0x7   :  { %859 = vmatprep.subr.bf16.mxu0 %v963_v1 }
   0x9   :  { %836 = vmatmul.mubr.msk.bf16.vlgmr.msra.gmra.mxu0 %vm58_vm1, %v908_v3 }
   0xa   :  { %875 = vmatprep.mubr.msk.bf16.mxu0 %vm964_vm0, %v963_v1 }
   0xb   :  { %14 = vsyncpa [#allocation3], 0  ;;  %v761_v4 = vld [vmem:[%s1255_s5] ss:$0 sm:$0xff]  ;;  %v909_v19 = vld [vmem:[%s1252_s2 + $0x38] sm:$0xff]   ;;  %vm646_vm8 = vcmask 97280  }
   0xc   :  { %840 = vmatpush3.bf16.msra.mxu1 %v909_v19  ;;  %v910_v20 = vld [vmem:[%s1252_s2 + $0x30] sm:$0xff]   ;;  %v911_v21 = vld [vmem:[%s1252_s2 + $0x28] sm:$0xff]   ;;  %v912_v22 = vld [vmem:[%s1252_s2 + $0x20] sm:$0xff]   ;;  %s750_s1 = sshll.u32 %s1258_s8, 4  ;;  %s751_s1 = int_to_ptr.vmem [resolvable:$true] %s750_s1 }
   0xd   :  { %841 = vmatprep.subr.bf16.mxu1 %v963_v1  ;;  %v913_v23 = vld [vmem:[%s1252_s2 + $0x18] sm:$0xff]   ;;  %v914_v24 = vld [vmem:[%s1252_s2 + $0x10] sm:$0xff]   ;;  %v915_v25 = vld [vmem:[%s1252_s2 + $0x8] sm:$0xff]   ;;  %s949_s12 = scalar_lea.vmem %s751_s1, 16  ;;  %p954_p1 = scmp.lt.s32.totalorder %s751_s1, %s751_s1 }
   0xe   :  { %v916_v26 = vld [vmem:[%s1252_s2] sm:$0xff]   ;;  %v917_v61 = vld [vmem:[%s1253_s3 + $0x38] sm:$0xff]   ;;  %v918_v62 = vld [vmem:[%s1253_s3 + $0x30] sm:$0xff]   ;;  %p950_p0 = scmp.ne.s32.totalorder %s751_s1, %s949_s12  ;;  %p955_p2 = scmp.lt.s32.totalorder %s949_s12, %s949_s12 }
   0xf   :  { %v766_v34 = vld [vmem:[%s1255_s5 + $0x1] ss:$0 sm:$0xff]  ;;  %v767_v38 = vld [vmem:[%s1255_s5 + $0x2] ss:$0 sm:$0xff]  ;;  %v768_v46 = vld [vmem:[%s1255_s5 + $0x3] ss:$0 sm:$0xff]  ;;  %860 = vmatpush3.bf16.msra.mxu0 %v917_v61 }
  0x10   :  { %842 = vmatpush3.bf16.msra.mxu1 %v910_v20  ;;  %861 = vmatprep.subr.bf16.mxu0 %v963_v1  ;;  %v919_v63 = vld [vmem:[%s1253_s3 + $0x28] sm:$0xff]   ;;  %v920_v0 = vld [vmem:[%s1253_s3 + $0x20] sm:$0xff]   ;;  %v921_v2 = vld [vmem:[%s1253_s3 + $0x18] sm:$0xff]   ;;  %p956_p3 = por %p955_p2, %p954_p1 }
  0x11   :  { %843 = vmatprep.subr.bf16.mxu1 %v963_v1  ;;  %v922_v3 = vld [vmem:[%s1253_s3 + $0x10] sm:$0xff]   ;;  %v932_v61 = vld [vmem:[%s1254_s4] sm:$0xff]  }
  0x12   :  { %p957_p4 = pnand %p956_p3, %p950_p0 }
  0x13   :  { %862 = vmatpush3.bf16.msra.mxu0 %v918_v62 }
  0x14   :  { %844 = vmatpush3.bf16.msra.mxu1 %v911_v21  ;;  %863 = vmatprep.subr.bf16.mxu0 %v963_v1 }
  0x15   :  { %845 = vmatprep.subr.bf16.mxu1 %v963_v1 }
  0x17   :  { %864 = vmatpush3.bf16.msra.mxu0 %v919_v63 }
  0x18   :  { %846 = vmatpush3.bf16.msra.mxu1 %v912_v22  ;;  %865 = vmatprep.subr.bf16.mxu0 %v963_v1 }
  0x19   :  { %847 = vmatprep.subr.bf16.mxu1 %v963_v1 }
  0x1b   :  { %866 = vmatpush3.bf16.msra.mxu0 %v920_v0 }
  0x1c   :  { %848 = vmatpush3.bf16.msra.mxu1 %v913_v23  ;;  %867 = vmatprep.subr.bf16.mxu0 %v963_v1 }
  0x1d   :  { %849 = vmatprep.subr.bf16.mxu1 %v963_v1 }
  0x1f   :  { %868 = vmatpush3.bf16.msra.mxu0 %v921_v2 }
  0x20   :  { %850 = vmatpush3.bf16.msra.mxu1 %v914_v24  ;;  %869 = vmatprep.subr.bf16.mxu0 %v963_v1 }
  0x21   :  { %851 = vmatprep.subr.bf16.mxu1 %v963_v1 }
  0x23   :  { %870 = vmatpush3.bf16.msra.mxu0 %v922_v3 }
  0x24   :  { %852 = vmatpush3.bf16.msra.mxu1 %v915_v25  ;;  %871 = vmatprep.subr.bf16.mxu0 %v963_v1  ;;  %v403_v25 = vlaneseq }
  0x25   :  { %853 = vmatprep.subr.bf16.mxu1 %v963_v1 }
  0x28   :  { %854 = vmatpush3.bf16.msra.mxu1 %v916_v26  ;;  %v779_v26 = vld [vmem:[%s1255_s5 + $0x6] ss:$0 sm:$0xff] }
  0x29   :  { %879 = vmatprep.subr.bf16.mxu1 %v963_v1 }
  0xc9   :  { %v96_v5 = vpop.f32.mrf.mxu0 }
  0xca   :  { %v97_v6 = vadd.f32 %v761_v4, %v96_v5  ;;  %v924_v5 = vld [vmem:[%s1253_s3] sm:$0xff]  }
  0xcb   :  { %v837_v7 = vpop.f32.mrf.mxu0 }
  0xcc   :  { %105 = vadd.xlane.f32.xlu0 %v97_v6 }
  0xcd   :  { %v99_v8 = vpop.f32.mrf.mxu0 }
  0xce   :  { %v100_v9 = vadd.f32 %v761_v4, %v99_v8  ;;  %v923_v4 = vld [vmem:[%s1253_s3 + $0x8] sm:$0xff]  }
  0xcf   :  { %v838_v10 = vpop.f32.mrf.mxu0  ;;  %872 = vmatpush3.bf16.msra.mxu0 %v923_v4 }
  0xd0   :  { %107 = vadd.xlane.f32.xlu0 %v100_v9  ;;  %873 = vmatprep.subr.bf16.mxu0 %v963_v1 }
  0xd3   :  { %874 = vmatpush3.bf16.msra.mxu0 %v924_v5 }
 0x155   :  { %v106_v11 = vpop.xlane.xlu0 %105 }
 0x156   :  { %v109_v12 = vmul.f32 0.0078125, %v106_v11 }
 0x158   :  { %v111_v13 = vsub.f32 %v97_v6, %v109_v12 }
 0x159   :  { %v108_v14 = vpop.xlane.xlu0 %107 }
 0x15a   :  { %v110_v15 = vmul.f32 0.0078125, %v108_v14  ;;  %v113_v16 = vmul.f32 %v111_v13, %v111_v13 }
 0x15c   :  { %v112_v17 = vsub.f32 %v100_v9, %v110_v15  ;;  %115 = vadd.xlane.f32.xlu1 %v113_v16 }
 0x15e   :  { %v114_v18 = vmul.f32 %v112_v17, %v112_v17 }
 0x160   :  { %117 = vadd.xlane.f32.xlu1 %v114_v18 }
 0x1e5   :  { %v116_v27 = vpop.xlane.xlu1 %115 }
 0x1e6   :  { %v119_v28 = vmul.f32 0.0078125, %v116_v27  ;;  %v1116_v27 = vand.u32 127, %v403_v25  ;;  %v790_v25 = vld [vmem:[%s1255_s5 + $0x9] ss:$0 sm:$0xff] }
 0x1e8   :  { %v121_v29 = vadd.f32 1e-05, %v119_v28  ;;  %vm405_vm2 = vcmp.lt.s32.totalorder %v1116_v27, 64  ;;  %vm580_vm3 = vcmp.ge.s32.totalorder %v1116_v27, 3  ;;  %vm581_vm4 = vcmp.lt.s32.totalorder %v1116_v27, 12 }
 0x1e9   :  { %v118_v30 = vpop.xlane.xlu1 %117  ;;  %vm1179_vm5 = vmand %vm580_vm3, %vm581_vm4  ;;  %vm579_vm6 = vcmp.lt.s32.totalorder %v1116_v27, 3 }
 0x1ea   :  { %933 = vrsqrt.f32 %v121_v29  ;;  %v120_v31 = vmul.f32 0.0078125, %v118_v30  ;;  %vm1194_vm7 = vmor %vm579_vm6, %vm1179_vm5 }
 0x1ec   :  { %v122_v32 = vadd.f32 1e-05, %v120_v31 }
 0x1ee   :  { %935 = vrsqrt.f32 %v122_v32 }
 0x1f7   :  { %v934_v33 = vpop.eup %933 }
 0x1f8   :  { %v125_v35 = vmul.f32 %v934_v33, %v111_v13  ;;  %v777_v13 = vld [vmem:[%s1255_s5 + $0x4] ss:$0 sm:$0xff] }
 0x1fa   :  { %v131_v36 = vmul.f32 %v766_v34, %v125_v35 }
 0x1fb   :  { %v936_v37 = vpop.eup %935 }
 0x1fc   :  { %v126_v39 = vmul.f32 %v936_v37, %v112_v17  ;;  %v137_v41 = vadd.f32 %v767_v38, %v131_v36  ;;  %v778_v17 = vld [vmem:[%s1255_s5 + $0x5] ss:$0 sm:$0xff] }
 0x1fe   :  { %v132_v40 = vmul.f32 %v766_v34, %v126_v39  ;;  %v139_v43 = vmax.f32 %v137_v41, 0.0 }
 0x200   :  { %v138_v42 = vadd.f32 %v767_v38, %v132_v40 }
 0x202   :  { %v140_v44 = vmax.f32 %v138_v42, 0.0 }
 0x204   :  { %v141_v45 = vpack.c.bf16 %v140_v44, %v139_v43 }
 0x206   :  { %856 = vmatmul.mubr.bf16.vlgmr.msra.gmra.mxu1 %v141_v45 }
 0x207   :  { %895 = vmatprep.mubr.msk.bf16.mxu1 %vm964_vm0, %v963_v1 }
 0x2c6   :  { %v245_v47 = vpop.f32.mrf.mxu1 }
 0x2c7   :  { %v246_v48 = vadd.f32 %v768_v46, %v245_v47 }
 0x2c8   :  { %v857_v49 = vpop.f32.mrf.mxu1 }
 0x2c9   :  { %254 = vadd.xlane.f32.xlu0 %v246_v48 }
 0x2ca   :  { %v248_v50 = vpop.f32.mrf.mxu1 }
 0x2cb   :  { %v249_v51 = vadd.f32 %v768_v46, %v248_v50 }
 0x2cc   :  { %v858_v52 = vpop.f32.mrf.mxu1 }
 0x2cd   :  { %256 = vadd.xlane.f32.xlu1 %v249_v51 }
 0x352   :  { %v255_v53 = vpop.xlane.xlu0 %254 }
 0x353   :  { %v258_v54 = vmul.f32 0.0078125, %v255_v53 }
 0x355   :  { %v260_v55 = vsub.f32 %v246_v48, %v258_v54  ;;  %v925_v54 = vld [vmem:[%s1254_s4 + $0x38] sm:$0xff]  }
 0x356   :  { %v257_v56 = vpop.xlane.xlu1 %256  ;;  %880 = vmatpush3.bf16.msra.mxu1 %v925_v54 }
 0x357   :  { %v259_v57 = vmul.f32 0.0078125, %v257_v56  ;;  %v262_v58 = vmul.f32 %v260_v55, %v260_v55  ;;  %881 = vmatprep.subr.bf16.mxu1 %v963_v1  ;;  %v927_v56 = vld [vmem:[%s1254_s4 + $0x28] sm:$0xff]  }
 0x359   :  { %v261_v59 = vsub.f32 %v249_v51, %v259_v57  ;;  %264 = vadd.xlane.f32.xlu0 %v262_v58  ;;  %v928_v57 = vld [vmem:[%s1254_s4 + $0x20] sm:$0xff]   ;;  %v929_v58 = vld [vmem:[%s1254_s4 + $0x18] sm:$0xff]  }
 0x35b   :  { %v263_v60 = vmul.f32 %v261_v59, %v261_v59 }
 0x35d   :  { %266 = vadd.xlane.f32.xlu1 %v263_v60  ;;  %v931_v60 = vld [vmem:[%s1254_s4 + $0x8] sm:$0xff]  }
 0x3e2   :  { %v265_v6 = vpop.xlane.xlu0 %264 }
 0x3e3   :  { %v268_v7 = vmul.f32 0.0078125, %v265_v6 }
 0x3e5   :  { %v270_v8 = vadd.f32 1e-05, %v268_v7 }
 0x3e6   :  { %v267_v9 = vpop.xlane.xlu1 %266 }
 0x3e7   :  { %937 = vrsqrt.f32 %v270_v8  ;;  %v269_v10 = vmul.f32 0.0078125, %v267_v9 }
 0x3e9   :  { %v271_v11 = vadd.f32 1e-05, %v269_v10 }
 0x3eb   :  { %939 = vrsqrt.f32 %v271_v11 }
 0x3f4   :  { %v938_v12 = vpop.eup %937 }
 0x3f5   :  { %v274_v14 = vmul.f32 %v938_v12, %v260_v55  ;;  %v926_v55 = vld [vmem:[%s1254_s4 + $0x30] sm:$0xff]  }
 0x3f6   :  { %882 = vmatpush3.bf16.msra.mxu1 %v926_v55 }
 0x3f7   :  { %v280_v15 = vmul.f32 %v777_v13, %v274_v14  ;;  %883 = vmatprep.subr.bf16.mxu1 %v963_v1 }
 0x3f8   :  { %v940_v16 = vpop.eup %939 }
 0x3f9   :  { %v275_v18 = vmul.f32 %v940_v16, %v261_v59  ;;  %v286_v20 = vadd.f32 %v778_v17, %v280_v15  ;;  %v930_v59 = vld [vmem:[%s1254_s4 + $0x10] sm:$0xff]  }
 0x3fa   :  { %884 = vmatpush3.bf16.msra.mxu1 %v927_v56 }
 0x3fb   :  { %v281_v19 = vmul.f32 %v777_v13, %v275_v18  ;;  %v288_v22 = vmax.f32 %v286_v20, 0.0  ;;  %885 = vmatprep.subr.bf16.mxu1 %v963_v1  ;;  %v788_v13 = vld [vmem:[%s1255_s5 + $0x7] ss:$0 sm:$0xff] }
 0x3fd   :  { %v287_v21 = vadd.f32 %v778_v17, %v281_v19  ;;  %v789_v17 = vld [vmem:[%s1255_s5 + $0x8] ss:$0 sm:$0xff] }
 0x3fe   :  { %886 = vmatpush3.bf16.msra.mxu1 %v928_v57 }
 0x3ff   :  { %v289_v23 = vmax.f32 %v287_v21, 0.0  ;;  %887 = vmatprep.subr.bf16.mxu1 %v963_v1 }
 0x401   :  { %v290_v24 = vpack.c.bf16 %v289_v23, %v288_v22 }
 0x402   :  { %888 = vmatpush3.bf16.msra.mxu1 %v929_v58 }
 0x403   :  { %876 = vmatmul.mubr.bf16.vlgmr.msra.gmra.mxu0 %v290_v24  ;;  %889 = vmatprep.subr.bf16.mxu1 %v963_v1 }
 0x406   :  { %890 = vmatpush3.bf16.msra.mxu1 %v930_v59 }
 0x407   :  { %891 = vmatprep.subr.bf16.mxu1 %v963_v1 }
 0x40a   :  { %892 = vmatpush3.bf16.msra.mxu1 %v931_v60 }
 0x40b   :  { %893 = vmatprep.subr.bf16.mxu1 %v963_v1 }
 0x40e   :  { %894 = vmatpush3.bf16.msra.mxu1 %v932_v61  ;;  %v799_v61 = vld [vmem:[%s1255_s5 + $0xa] ss:$0 sm:$0xff] }
 0x4c3   :  { %v394_v28 = vpop.f32.mrf.mxu0 }
 0x4c4   :  { %v395_v29 = vadd.f32 %v779_v26, %v394_v28 }
 0x4c5   :  { %v877_v30 = vpop.f32.mrf.mxu0 }
 0x4c6   :  { %406 = vadd.xlane.f32.xlu0 %v395_v29  ;;  %v410_v34 = vsel %vm405_vm2, %v395_v29, 0.0 }
 0x4c7   :  { %v397_v31 = vpop.f32.mrf.mxu0 }
 0x4c8   :  { %v398_v32 = vadd.f32 %v779_v26, %v397_v31 }
 0x4c9   :  { %v878_v33 = vpop.f32.mrf.mxu0 }
 0x4ca   :  { %412 = vadd.xlane.f32.xlu0 %v410_v34  ;;  %408 = vadd.xlane.f32.xlu1 %v398_v32  ;;  %v411_v35 = vsel %vm405_vm2, %v398_v32, 0.0 }
 0x4ce   :  { %414 = vadd.xlane.f32.xlu1 %v411_v35 }
 0x54f   :  { %v407_v36 = vpop.xlane.xlu0 %406 }
 0x553   :  { %v413_v37 = vpop.xlane.xlu0 %412  ;;  %v409_v38 = vpop.xlane.xlu1 %408 }
 0x554   :  { %v418_v39 = vsub.f32 %v407_v36, %v413_v37  ;;  %v416_v40 = vmul.f32 0.015625, %v413_v37 }
 0x556   :  { %v420_v41 = vmul.f32 0.015625, %v418_v39 }
 0x557   :  { %v415_v42 = vpop.xlane.xlu1 %414 }
 0x558   :  { %v419_v43 = vsub.f32 %v409_v38, %v415_v42  ;;  %v422_v44 = vsel %vm405_vm2, %v416_v40, %v420_v41  ;;  %v417_v46 = vmul.f32 0.015625, %v415_v42 }
 0x559   :  { %v424_v45 = vsub.f32 %v395_v29, %v422_v44 }
 0x55a   :  { %v421_v47 = vmul.f32 0.015625, %v419_v43 }
 0x55b   :  { %v426_v48 = vmul.f32 %v424_v45, %v424_v45 }
 0x55c   :  { %v423_v49 = vsel %vm405_vm2, %v417_v46, %v421_v47 }
 0x55d   :  { %428 = vadd.xlane.f32.xlu0 %v426_v48  ;;  %v425_v50 = vsub.f32 %v398_v32, %v423_v49  ;;  %v432_v52 = vsel %vm405_vm2, %v426_v48, 0.0 }
 0x55f   :  { %v427_v51 = vmul.f32 %v425_v50, %v425_v50 }
 0x561   :  { %434 = vadd.xlane.f32.xlu0 %v432_v52  ;;  %430 = vadd.xlane.f32.xlu1 %v427_v51  ;;  %v433_v53 = vsel %vm405_vm2, %v427_v51, 0.0 }
 0x565   :  { %436 = vadd.xlane.f32.xlu1 %v433_v53 }
 0x5e6   :  { %v429_v62 = vpop.xlane.xlu0 %428 }
 0x5ea   :  { %v435_v63 = vpop.xlane.xlu0 %434  ;;  %v431_v0 = vpop.xlane.xlu1 %430 }
 0x5eb   :  { %v440_v2 = vsub.f32 %v429_v62, %v435_v63  ;;  %v438_v3 = vmul.f32 0.015625, %v435_v63 }
 0x5ed   :  { %v442_v4 = vmul.f32 0.015625, %v440_v2 }
 0x5ee   :  { %v437_v5 = vpop.xlane.xlu1 %436 }
 0x5ef   :  { %v444_v6 = vsel %vm405_vm2, %v438_v3, %v442_v4  ;;  %v441_v7 = vsub.f32 %v431_v0, %v437_v5  ;;  %v439_v9 = vmul.f32 0.015625, %v437_v5  ;;  %v800_v0 = vld [vmem:[%s1255_s5 + $0xb] ss:$0 sm:$0xff]  ;;  %v649_v3 = vld [vmem:[%s1256_s6] sm:$0xff] }
 0x5f0   :  { %v446_v8 = vadd.f32 1e-05, %v444_v6 }
 0x5f1   :  { %v443_v10 = vmul.f32 0.015625, %v441_v7 }
 0x5f2   :  { %941 = vrsqrt.f32 %v446_v8 }
 0x5f3   :  { %v445_v11 = vsel %vm405_vm2, %v439_v9, %v443_v10 }
 0x5f4   :  { %v447_v1 = vadd.f32 1e-05, %v445_v11 }
 0x5f6   :  { %943 = vrsqrt.f32 %v447_v1 }
 0x5ff   :  { %v942_v12 = vpop.eup %941 }
 0x600   :  { %v450_v14 = vmul.f32 %v942_v12, %v424_v45 }
 0x602   :  { %v456_v15 = vmul.f32 %v788_v13, %v450_v14 }
 0x603   :  { %v944_v16 = vpop.eup %943 }
 0x604   :  { %v451_v18 = vmul.f32 %v944_v16, %v425_v50  ;;  %v462_v20 = vadd.f32 %v789_v17, %v456_v15 }
 0x606   :  { %v457_v19 = vmul.f32 %v788_v13, %v451_v18  ;;  %v464_v22 = vmax.f32 %v462_v20, 0.0 }
 0x608   :  { %v463_v21 = vadd.f32 %v789_v17, %v457_v19 }
 0x60a   :  { %v465_v23 = vmax.f32 %v463_v21, 0.0 }
 0x60c   :  { %v466_v24 = vpack.c.bf16 %v465_v23, %v464_v22 }
 0x60e   :  { %896 = vmatmul.mubr.bf16.vlgmr.msra.gmra.mxu1 %v466_v24 }
 0x6ce   :  { %v570_v26 = vpop.f32.mrf.mxu1 }
 0x6cf   :  { %v571_v29 = vadd.f32 %v790_v25, %v570_v26 }
 0x6d0   :  { %v897_v30 = vpop.f32.mrf.mxu1 }
 0x6d1   :  { %v589_v31 = vsel %vm1179_vm5, %v571_v29, 0.0  ;;  %v583_v32 = vsel %vm579_vm6, %v571_v29, 0.0 }
 0x6d2   :  { %591 = vadd.xlane.f32.xlu1 %v589_v31  ;;  %585 = vadd.xlane.f32.xlu0 %v583_v32  ;;  %v573_v33 = vpop.f32.mrf.mxu1 }
 0x6d3   :  { %v574_v34 = vadd.f32 %v790_v25, %v573_v33 }
 0x6d4   :  { %v898_v35 = vpop.f32.mrf.mxu1 }
 0x6d5   :  { %v590_v47 = vsel %vm1179_vm5, %v574_v34, 0.0  ;;  %v584_v48 = vsel %vm579_vm6, %v574_v34, 0.0 }
 0x75b   :  { %v592_v36 = vpop.xlane.xlu1 %591  ;;  %v586_v37 = vpop.xlane.xlu0 %585 }
 0x75c   :  { %v597_v38 = vmul.f32 0.11111111, %v592_v36  ;;  %v595_v39 = vmul.f32 0.33333334, %v586_v37 }
 0x75e   :  { %v599_v40 = vsel %vm579_vm6, %v595_v39, %v597_v38 }
 0x75f   :  { %v602_v42 = vsub.f32 %v571_v29, %v599_v40 }
 0x761   :  { %v604_v43 = vsel %vm1194_vm7, %v602_v42, 0.0 }
 0x762   :  { %v606_v44 = vmul.f32 %v604_v43, %v604_v43 }
 0x764   :  { %v616_v45 = vsel %vm1179_vm5, %v606_v44, 0.0  ;;  %v608_v46 = vsel %vm579_vm6, %v606_v44, 0.0 }
 0x765   :  { %618 = vadd.xlane.f32.xlu0 %v616_v45  ;;  %610 = vadd.xlane.f32.xlu1 %v608_v46 }
 0x769   :  { %593 = vadd.xlane.f32.xlu1 %v590_v47  ;;  %587 = vadd.xlane.f32.xlu0 %v584_v48 }
 0x7ee   :  { %v619_v49 = vpop.xlane.xlu0 %618  ;;  %v611_v50 = vpop.xlane.xlu1 %610 }
 0x7ef   :  { %v622_v51 = vmul.f32 0.11111111, %v619_v49  ;;  %v614_v52 = vmul.f32 0.33333334, %v611_v50 }
 0x7f1   :  { %v624_v53 = vsel %vm1179_vm5, %v622_v51, 1.0 }
 0x7f2   :  { %v626_v54 = vsel %vm579_vm6, %v614_v52, %v624_v53  ;;  %v594_v56 = vpop.xlane.xlu1 %593  ;;  %v588_v57 = vpop.xlane.xlu0 %587 }
 0x7f3   :  { %v628_v55 = vadd.f32 1e-05, %v626_v54  ;;  %v598_v58 = vmul.f32 0.11111111, %v594_v56  ;;  %v596_v59 = vmul.f32 0.33333334, %v588_v57 }
 0x7f5   :  { %945 = vrsqrt.f32 %v628_v55  ;;  %v600_v63 = vsel %vm579_vm6, %v596_v59, %v598_v58 }
 0x7f6   :  { %v603_v5 = vsub.f32 %v574_v34, %v600_v63 }
 0x7f8   :  { %v605_v9 = vsel %vm1194_vm7, %v603_v5, 0.0 }
 0x7f9   :  { %v607_v13 = vmul.f32 %v605_v9, %v605_v9 }
 0x7fb   :  { %v617_v14 = vsel %vm1179_vm5, %v607_v13, 0.0  ;;  %v609_v15 = vsel %vm579_vm6, %v607_v13, 0.0 }
 0x802   :  { %v946_v60 = vpop.eup %945 }
 0x803   :  { %v632_v62 = vmul.f32 %v946_v60, %v604_v43 }
 0x805   :  { %v638_v2 = vmul.f32 %v799_v61, %v632_v62 }
 0x807   :  { %v644_v4 = vadd.f32 %v800_v0, %v638_v2 }
 0x809   :  { %647 = vst.msk [vmem:[%s1257_s7] sm:$0xff] %vm646_vm8, %v644_v4  ;;  %v651_v6 = vsub.f32 %v644_v4, %v649_v3 }
 0x80b   :  { %v724_v7 = vand.u32 2147483647, %v651_v6  ;;  %v706_v8 = vmul.f32 %v651_v6, %v651_v6 }
 0x80d   :  { %v726_v10 = vsel %vm580_vm3, %v724_v7, 0.0  ;;  %v708_v11 = vsel %vm579_vm6, %v706_v8, 0.0 }
 0x80e   :  { %v728_v1 = vsel %vm646_vm8, %v726_v10, 0.0  ;;  %v710_v12 = vsel %vm646_vm8, %v708_v11, 0.0 }
 0x80f   :  { %731 = vadd.xlane.f32.xlu1 %v728_v1  ;;  %713 = vadd.xlane.f32.xlu0 %v710_v12 }
 0x813   :  { %620 = vadd.xlane.f32.xlu0 %v617_v14  ;;  %612 = vadd.xlane.f32.xlu1 %v609_v15 }
 0x898   :  { %v732_v16 = vpop.xlane.xlu1 %731  ;;  %v714_v17 = vpop.xlane.xlu0 %713 }
 0x899   :  { %v733_v18 = vrot.slane %v732_v16, 4  ;;  %v715_v19 = vrot.slane %v714_v17, 4 }
 0x89b   :  { %v734_v20 = vadd.f32 %v733_v18, %v732_v16  ;;  %v716_v21 = vadd.f32 %v715_v19, %v714_v17 }
 0x89c   :  { %v613_v22 = vpop.xlane.xlu1 %612  ;;  %v621_v23 = vpop.xlane.xlu0 %620 }
 0x89d   :  { %v735_v24 = vrot.slane %v734_v20, 2  ;;  %v717_v25 = vrot.slane %v716_v21, 2  ;;  %v615_v26 = vmul.f32 0.33333334, %v613_v22  ;;  %v623_v29 = vmul.f32 0.11111111, %v621_v23 }
 0x89f   :  { %v625_v30 = vsel %vm1179_vm5, %v623_v29, 1.0  ;;  %v718_v31 = vadd.f32 %v717_v25, %v716_v21  ;;  %v736_v32 = vadd.f32 %v735_v24, %v734_v20 }
 0x8a0   :  { %v627_v33 = vsel %vm579_vm6, %v615_v26, %v625_v30 }
 0x8a1   :  { %v629_v34 = vadd.f32 1e-05, %v627_v33  ;;  %v719_v35 = vrot.slane %v718_v31, 1  ;;  %v737_v36 = vrot.slane %v736_v32, 1 }
 0x8a3   :  { %947 = vrsqrt.f32 %v629_v34  ;;  %v720_v37 = vadd.f32 %v719_v35, %v718_v31  ;;  %v738_v38 = vadd.f32 %v737_v36, %v736_v32 }
 0x8a5   :  { %899 = vpush %v720_v37 }
 0x8a6   :  { %901 = vpush %v738_v38 }
 0x8b0   :  { %v948_v39 = vpop.eup %947 }
 0x8b1   :  { %v633_v40 = vmul.f32 %v948_v39, %v605_v9 }
 0x8b3   :  { %v639_v41 = vmul.f32 %v799_v61, %v633_v40 }
 0x8b5   :  { %v645_v42 = vadd.f32 %v800_v0, %v639_v41 }
 0x8b7   :  { %648 = vst.msk [vmem:[%s1257_s7 + $0x8] sm:$0xff] %vm646_vm8, %v645_v42 }
 0x8d6   :  { %s900_s11 = spop %899 }
 0x8d7   :  { %723 = sst [smem:[#allocation2]] %s900_s11  ;;  %s902_s0 = spop %901 }
 0x8d8   :  { %741 = sst [smem:[#allocation2 + $0x1]] %s902_s0 }
 0x8d9   :  { %960 = shalt.err (!%p957_p4)
}
 0x8da   :  { %s965_s13 = smov [#allocation2]  }
 0x8db   :  { %753 = dma.smem_to_vmem %s965_s13, 16, %s751_s1, [#allocation3]  }
 0x8dc   :  { %961 = dma.done.wait [#allocation3], 16  }
 0x8dd   :  { %962 = vsyncadd [#allocation3], 4294967280 }
 0x8de   :  { %759 = sfence }
 0x8df   :  { %760 = vsyncpa [#allocation3], 1 }

</bundles_post_ra>
